<compile_context>
chip_gen: v7x
topology: tpu7x:2x2x1
jax: 0.10.0
libtpu: 0.0.40
codegen_flags: <defaults>
</compile_context>

<pallas_src>
import functools

import jax
import jax.numpy as jnp
from jax.experimental import pallas as pl
from jax.experimental.pallas import tpu as pltpu

VMEM = pltpu.MemorySpace.VMEM


def _vspec():
    # whole-array block resident in VMEM (single fused invocation, no grid)
    return pl.BlockSpec(memory_space=VMEM)


# ---------------------------------------------------------------------------
# Fused forward kernel
# ---------------------------------------------------------------------------
def _qgnn_fused_kernel(adj_ref, x_ref,
                       w01_ref, h2_ref, h3_ref, h4_ref, h5_ref,
                       menk_ref, wout_ref,
                       w1_ref, b1_ref, w12_ref, b12_ref, w2a_ref, w2b_ref, b2_ref,
                       out_ref, *, nhid, nclass):
    nq = nhid // 4
    adj = adj_ref[...]                                   # (N, N) bf16

    def prop(v, w, tanh_act):
        # QGNNLayer: act(adj @ (v @ W)); f32 feature matmul, bf16 adj operand,
        # f32 accumulation on the MXU.
        support = jnp.dot(v, w, preferred_element_type=jnp.float32)
        out = jnp.dot(adj, support.astype(jnp.bfloat16),
                      preferred_element_type=jnp.float32)
        return jnp.tanh(out) if tanh_act else out

    x = x_ref[...]                                       # (N, nfeat) f32

    # --- q4gnn0 + q4gnn1 fused as one wide matmul pair ----------------------
    yy = prop(x, w01_ref[...], True)                     # (N, 2*nhid)
    y0 = yy[:, :nhid]                                    # q4gnn0 output
    xh = yy[:, nhid:]                                    # q4gnn1 output

    x1 = xh[:, 0 * nq:1 * nq]
    x2 = xh[:, 1 * nq:2 * nq]
    x3 = xh[:, 2 * nq:3 * nq]
    x4 = xh[:, 3 * nq:4 * nq]

    menk = menk_ref[...]
    # Sequential branch chain (cannot be merged across stages: y_i feeds x_{i+1}).
    y1 = prop(x1, h2_ref[...], True)                     # q4gnn2 (ALL_select approx)
    x2 = prop(y1, menk, False) * x2                      # menk1 gating
    y2 = prop(x2, h3_ref[...], True)                     # q4gnn3
    x3 = prop(y2, menk, False) * x3                      # menk1 (reused, as in torch)
    y3 = prop(x3, h4_ref[...], True)                     # q4gnn4
    x4 = prop(y3, menk, False) * x4                      # menk1 (reused)
    y4 = prop(x4, h5_ref[...], True)                     # q4gnn5

    y = jnp.concatenate([y1, y2, y3, y4], axis=1)        # (N, nhid)

    # --- Graph_channel (inlined; concat folded into W2 = [W2a; W2b]) -------
    m = jnp.mean(y, axis=0, keepdims=True)               # (1, nhid)
    x2c = jnp.dot(m, w1_ref[...], preferred_element_type=jnp.float32) + b1_ref[...]
    t = jnp.dot(m, w12_ref[...], preferred_element_type=jnp.float32) + b12_ref[...]
    ha = jnp.maximum(x2c * jnp.cos(t), 0.0)              # (1, 7)
    hb = jnp.maximum(x2c * jnp.sin(t), 0.0)              # (1, 7)
    o = (jnp.dot(ha, w2a_ref[...], preferred_element_type=jnp.float32)
         + jnp.dot(hb, w2b_ref[...], preferred_element_type=jnp.float32)
         + b2_ref[...])                                  # (1, nhid)
    y_channel = 1.0 / (1.0 + jnp.exp(-o))                # sigmoid, f32

    # --- scale_add epilogue -------------------------------------------------
    y = y * y_channel + y0                               # (N, nhid)

    # --- output layer + log-softmax over (padded, lane-dense) classes ------
    support = jnp.dot(y, wout_ref[...], preferred_element_type=jnp.float32)
    logits = jnp.dot(adj, support.astype(jnp.bfloat16),
                     preferred_element_type=jnp.float32)  # (N, C_pad)
    col = jax.lax.broadcasted_iota(jnp.int32, logits.shape, 1)
    logits = jnp.where(col < nclass, logits, jnp.float32(-1e30))
    mrow = jnp.max(logits, axis=-1, keepdims=True)
    z = logits - mrow
    lse = jnp.log(jnp.sum(jnp.exp(z), axis=-1, keepdims=True))
    out_ref[...] = (z - lse).astype(out_ref.dtype)


# ---------------------------------------------------------------------------
# Wrapper
# ---------------------------------------------------------------------------
def qgnn_forward(x, adj, params, nhid, nclass):
    n = x.shape[0]
    cpad = max(128, ((nclass + 127) // 128) * 128)       # lane-dense output store

    adj_bf16 = adj.astype(jnp.bfloat16)                  # halve adj HBM/VMEM footprint
    w01 = jnp.concatenate([params["h0"], params["h1"]], axis=1)   # fuse q4gnn0/q4gnn1
    wout_pad = jnp.zeros((nhid, cpad), jnp.float32).at[:, :nclass].set(params["wout"])
    w2a, w2b = params["gc_w2"][:7, :], params["gc_w2"][7:, :]

    out_pad = pl.pallas_call(
        functools.partial(_qgnn_fused_kernel, nhid=nhid, nclass=nclass),
        out_shape=jax.ShapeDtypeStruct((n, cpad), jnp.float32),
        in_specs=[_vspec()] * 16,
        out_specs=_vspec(),
        compiler_params=pltpu.CompilerParams(
            vmem_limit_bytes=48 * 1024 * 1024),          # safe on v5e/v6e/v7x
    )(adj_bf16, x,
      w01, params["h2"], params["h3"], params["h4"], params["h5"],
      params["menk1"], wout_pad,
      params["gc_w1"], params["gc_b1"], params["gc_w12"], params["gc_b12"],
      w2a, w2b, params["gc_b2"])
    return out_pad[:, :nclass]


# ---------------------------------------------------------------------------
# Plain-JAX glue: quaternion weight expansion, parameter init
# ---------------------------------------------------------------------------
def make_quaternion_mul(kernel):
    """kernel: (in//4, out) -> hamilton: (in, out), matching the QGNN repo."""
    r, i, j, k = jnp.split(kernel, 4, axis=1)
    r2 = jnp.concatenate([r, -i, -j, -k], axis=0)
    i2 = jnp.concatenate([i, r, -k, j], axis=0)
    j2 = jnp.concatenate([j, k, r, -i], axis=0)
    k2 = jnp.concatenate([k, -j, i, r], axis=0)
    return jnp.concatenate([r2, i2, j2, k2], axis=1)


def glorot_uniform(key, shape):
    stdv = (6.0 / (shape[0] + shape[1])) ** 0.5
    return jax.random.uniform(key, shape, jnp.float32, -stdv, stdv)


def linear_init(key, in_f, out_f):
    # PyTorch nn.Linear default init; weight stored as (in, out) so the
    # kernel computes x @ W + b (== x @ weight.T + b in torch).
    kw, kb = jax.random.split(key)
    bound = 1.0 / (in_f ** 0.5)
    w = jax.random.uniform(kw, (in_f, out_f), jnp.float32, -bound, bound)
    b = jax.random.uniform(kb, (1, out_f), jnp.float32, -bound, bound)
    return w, b


def init_params(key, nfeat, nhid, nclass):
    nq = nhid // 4
    keys = jax.random.split(key, 12)
    p = {}
    # quaternion layers: raw weight (in//4, out), expanded to hamilton (in, out)
    p["h0"] = make_quaternion_mul(glorot_uniform(keys[0], (nfeat // 4, nhid)))   # q4gnn0
    p["h1"] = make_quaternion_mul(glorot_uniform(keys[1], (nfeat // 4, nhid)))   # q4gnn1
    p["h2"] = make_quaternion_mul(glorot_uniform(keys[2], (nq // 4, nq)))        # q4gnn2 (ALL_select)
    p["h3"] = make_quaternion_mul(glorot_uniform(keys[3], (nq // 4, nq)))        # q4gnn3
    p["h4"] = make_quaternion_mul(glorot_uniform(keys[4], (nq // 4, nq)))        # q4gnn4
    p["h5"] = make_quaternion_mul(glorot_uniform(keys[5], (nq // 4, nq)))        # q4gnn5
    # plain (quaternion_ff=False) layers
    p["menk1"] = glorot_uniform(keys[6], (nq, nq))
    p["wout"] = glorot_uniform(keys[7], (nhid, nclass))
    # Graph_channel
    p["gc_w1"], p["gc_b1"] = linear_init(keys[8], nhid, 7)
    p["gc_w12"], p["gc_b12"] = linear_init(keys[9], nhid, 7)
    p["gc_w2"], p["gc_b2"] = linear_init(keys[10], 14, nhid)
    return p


# ---------------------------------------------------------------------------
if __name__ == "__main__":
    N, NFEAT, NHID, NCLASS = 16, 16, 32, 8

    key = jax.random.PRNGKey(0)
    k_x, k_adj, k_p = jax.random.split(key, 3)

    # node features
    x = jax.random.normal(k_x, (N, NFEAT), jnp.float32)

    # deterministic symmetric, self-looped, row-normalized dense adjacency
    a = (jax.random.uniform(k_adj, (N, N)) < 0.3).astype(jnp.float32)
    a = jnp.clip(a + a.T + jnp.eye(N, dtype=jnp.float32), 0.0, 1.0)
    adj = a / jnp.sum(a, axis=1, keepdims=True)

    params = init_params(k_p, NFEAT, NHID, NCLASS)

    fwd = jax.jit(functools.partial(qgnn_forward, nhid=NHID, nclass=NCLASS))
    out = fwd(x, adj, params)
    out = jax.block_until_ready(out)

    assert out.shape == (N, NCLASS)
    assert bool(jnp.all(jnp.isfinite(out)))
    # log_softmax rows should (exp-)sum to ~1
    assert bool(jnp.allclose(jnp.sum(jnp.exp(out), axis=1), 1.0, atol=1e-3))
    print("KERNEL_OK")
</pallas_src>

<mosaic_0001>
module attributes {stable_mosaic.version = 11 : i64} {
  func.func @_qgnn_fused_kernel(%arg0: memref<16x16xbf16, #tpu.memory_space<vmem>>, %arg1: memref<16x16xf32, #tpu.memory_space<vmem>>, %arg2: memref<16x64xf32, #tpu.memory_space<vmem>>, %arg3: memref<8x8xf32, #tpu.memory_space<vmem>>, %arg4: memref<8x8xf32, #tpu.memory_space<vmem>>, %arg5: memref<8x8xf32, #tpu.memory_space<vmem>>, %arg6: memref<8x8xf32, #tpu.memory_space<vmem>>, %arg7: memref<8x8xf32, #tpu.memory_space<vmem>>, %arg8: memref<32x128xf32, #tpu.memory_space<vmem>>, %arg9: memref<32x7xf32, #tpu.memory_space<vmem>>, %arg10: memref<1x7xf32, #tpu.memory_space<vmem>>, %arg11: memref<32x7xf32, #tpu.memory_space<vmem>>, %arg12: memref<1x7xf32, #tpu.memory_space<vmem>>, %arg13: memref<7x32xf32, #tpu.memory_space<vmem>>, %arg14: memref<7x32xf32, #tpu.memory_space<vmem>>, %arg15: memref<1x32xf32, #tpu.memory_space<vmem>>, %arg16: memref<16x128xf32, #tpu.memory_space<vmem>>) attributes {dimension_semantics = [], scalar_prefetch = 0 : i64, scratch_operands = 0 : i64, tpu.core_type = #tpu.core_type<tc>} {
    %c0 = arith.constant 0 : index
    %c0_0 = arith.constant 0 : index
    %0 = vector.load %arg0[%c0, %c0_0] : memref<16x16xbf16, #tpu.memory_space<vmem>>, vector<16x16xbf16>
    %c0_1 = arith.constant 0 : index
    %c0_2 = arith.constant 0 : index
    %1 = vector.load %arg1[%c0_1, %c0_2] : memref<16x16xf32, #tpu.memory_space<vmem>>, vector<16x16xf32>
    %c0_3 = arith.constant 0 : index
    %c0_4 = arith.constant 0 : index
    %2 = vector.load %arg2[%c0_3, %c0_4] : memref<16x64xf32, #tpu.memory_space<vmem>>, vector<16x64xf32>
    %cst = arith.constant dense<0.000000e+00> : vector<16x64xf32>
    %3 = tpu.matmul %1, %2, %cst {dimension_numbers = #tpu.dot_dimension_numbers<[1], [0], [0], [1], [0, 0, 1, 1], [], []>} : vector<16x16xf32>, vector<16x64xf32>, vector<16x64xf32> -> vector<16x64xf32>
    %4 = arith.truncf %3 : vector<16x64xf32> to vector<16x64xbf16>
    %cst_5 = arith.constant dense<0.000000e+00> : vector<16x64xf32>
    %5 = tpu.matmul %0, %4, %cst_5 {dimension_numbers = #tpu.dot_dimension_numbers<[1], [0], [0], [1], [0, 0, 1, 1], [], []>} : vector<16x16xbf16>, vector<16x64xbf16>, vector<16x64xf32> -> vector<16x64xf32>
    %6 = math.tanh %5 : vector<16x64xf32>
    %7 = vector.extract_strided_slice %6 {offsets = [0, 0], sizes = [16, 32], strides = [1, 1]} : vector<16x64xf32> to vector<16x32xf32>
    %8 = vector.extract_strided_slice %6 {offsets = [0, 32], sizes = [16, 32], strides = [1, 1]} : vector<16x64xf32> to vector<16x32xf32>
    %9 = vector.extract_strided_slice %8 {offsets = [0, 0], sizes = [16, 8], strides = [1, 1]} : vector<16x32xf32> to vector<16x8xf32>
    %10 = vector.extract_strided_slice %8 {offsets = [0, 8], sizes = [16, 8], strides = [1, 1]} : vector<16x32xf32> to vector<16x8xf32>
    %11 = vector.extract_strided_slice %8 {offsets = [0, 16], sizes = [16, 8], strides = [1, 1]} : vector<16x32xf32> to vector<16x8xf32>
    %12 = vector.extract_strided_slice %8 {offsets = [0, 24], sizes = [16, 8], strides = [1, 1]} : vector<16x32xf32> to vector<16x8xf32>
    %c0_6 = arith.constant 0 : index
    %c0_7 = arith.constant 0 : index
    %13 = vector.load %arg7[%c0_6, %c0_7] : memref<8x8xf32, #tpu.memory_space<vmem>>, vector<8x8xf32>
    %c0_8 = arith.constant 0 : index
    %c0_9 = arith.constant 0 : index
    %14 = vector.load %arg3[%c0_8, %c0_9] : memref<8x8xf32, #tpu.memory_space<vmem>>, vector<8x8xf32>
    %cst_10 = arith.constant dense<0.000000e+00> : vector<16x8xf32>
    %15 = tpu.matmul %9, %14, %cst_10 {dimension_numbers = #tpu.dot_dimension_numbers<[1], [0], [0], [1], [0, 0, 1, 1], [], []>} : vector<16x8xf32>, vector<8x8xf32>, vector<16x8xf32> -> vector<16x8xf32>
    %16 = arith.truncf %15 : vector<16x8xf32> to vector<16x8xbf16>
    %cst_11 = arith.constant dense<0.000000e+00> : vector<16x8xf32>
    %17 = tpu.matmul %0, %16, %cst_11 {dimension_numbers = #tpu.dot_dimension_numbers<[1], [0], [0], [1], [0, 0, 1, 1], [], []>} : vector<16x16xbf16>, vector<16x8xbf16>, vector<16x8xf32> -> vector<16x8xf32>
    %18 = math.tanh %17 : vector<16x8xf32>
    %cst_12 = arith.constant dense<0.000000e+00> : vector<16x8xf32>
    %19 = tpu.matmul %18, %13, %cst_12 {dimension_numbers = #tpu.dot_dimension_numbers<[1], [0], [0], [1], [0, 0, 1, 1], [], []>} : vector<16x8xf32>, vector<8x8xf32>, vector<16x8xf32> -> vector<16x8xf32>
    %20 = arith.truncf %19 : vector<16x8xf32> to vector<16x8xbf16>
    %cst_13 = arith.constant dense<0.000000e+00> : vector<16x8xf32>
    %21 = tpu.matmul %0, %20, %cst_13 {dimension_numbers = #tpu.dot_dimension_numbers<[1], [0], [0], [1], [0, 0, 1, 1], [], []>} : vector<16x16xbf16>, vector<16x8xbf16>, vector<16x8xf32> -> vector<16x8xf32>
    %22 = arith.mulf %21, %10 : vector<16x8xf32>
    %c0_14 = arith.constant 0 : index
    %c0_15 = arith.constant 0 : index
    %23 = vector.load %arg4[%c0_14, %c0_15] : memref<8x8xf32, #tpu.memory_space<vmem>>, vector<8x8xf32>
    %cst_16 = arith.constant dense<0.000000e+00> : vector<16x8xf32>
    %24 = tpu.matmul %22, %23, %cst_16 {dimension_numbers = #tpu.dot_dimension_numbers<[1], [0], [0], [1], [0, 0, 1, 1], [], []>} : vector<16x8xf32>, vector<8x8xf32>, vector<16x8xf32> -> vector<16x8xf32>
    %25 = arith.truncf %24 : vector<16x8xf32> to vector<16x8xbf16>
    %cst_17 = arith.constant dense<0.000000e+00> : vector<16x8xf32>
    %26 = tpu.matmul %0, %25, %cst_17 {dimension_numbers = #tpu.dot_dimension_numbers<[1], [0], [0], [1], [0, 0, 1, 1], [], []>} : vector<16x16xbf16>, vector<16x8xbf16>, vector<16x8xf32> -> vector<16x8xf32>
    %27 = math.tanh %26 : vector<16x8xf32>
    %cst_18 = arith.constant dense<0.000000e+00> : vector<16x8xf32>
    %28 = tpu.matmul %27, %13, %cst_18 {dimension_numbers = #tpu.dot_dimension_numbers<[1], [0], [0], [1], [0, 0, 1, 1], [], []>} : vector<16x8xf32>, vector<8x8xf32>, vector<16x8xf32> -> vector<16x8xf32>
    %29 = arith.truncf %28 : vector<16x8xf32> to vector<16x8xbf16>
    %cst_19 = arith.constant dense<0.000000e+00> : vector<16x8xf32>
    %30 = tpu.matmul %0, %29, %cst_19 {dimension_numbers = #tpu.dot_dimension_numbers<[1], [0], [0], [1], [0, 0, 1, 1], [], []>} : vector<16x16xbf16>, vector<16x8xbf16>, vector<16x8xf32> -> vector<16x8xf32>
    %31 = arith.mulf %30, %11 : vector<16x8xf32>
    %c0_20 = arith.constant 0 : index
    %c0_21 = arith.constant 0 : index
    %32 = vector.load %arg5[%c0_20, %c0_21] : memref<8x8xf32, #tpu.memory_space<vmem>>, vector<8x8xf32>
    %cst_22 = arith.constant dense<0.000000e+00> : vector<16x8xf32>
    %33 = tpu.matmul %31, %32, %cst_22 {dimension_numbers = #tpu.dot_dimension_numbers<[1], [0], [0], [1], [0, 0, 1, 1], [], []>} : vector<16x8xf32>, vector<8x8xf32>, vector<16x8xf32> -> vector<16x8xf32>
    %34 = arith.truncf %33 : vector<16x8xf32> to vector<16x8xbf16>
    %cst_23 = arith.constant dense<0.000000e+00> : vector<16x8xf32>
    %35 = tpu.matmul %0, %34, %cst_23 {dimension_numbers = #tpu.dot_dimension_numbers<[1], [0], [0], [1], [0, 0, 1, 1], [], []>} : vector<16x16xbf16>, vector<16x8xbf16>, vector<16x8xf32> -> vector<16x8xf32>
    %36 = math.tanh %35 : vector<16x8xf32>
    %cst_24 = arith.constant dense<0.000000e+00> : vector<16x8xf32>
    %37 = tpu.matmul %36, %13, %cst_24 {dimension_numbers = #tpu.dot_dimension_numbers<[1], [0], [0], [1], [0, 0, 1, 1], [], []>} : vector<16x8xf32>, vector<8x8xf32>, vector<16x8xf32> -> vector<16x8xf32>
    %38 = arith.truncf %37 : vector<16x8xf32> to vector<16x8xbf16>
    %cst_25 = arith.constant dense<0.000000e+00> : vector<16x8xf32>
    %39 = tpu.matmul %0, %38, %cst_25 {dimension_numbers = #tpu.dot_dimension_numbers<[1], [0], [0], [1], [0, 0, 1, 1], [], []>} : vector<16x16xbf16>, vector<16x8xbf16>, vector<16x8xf32> -> vector<16x8xf32>
    %40 = arith.mulf %39, %12 : vector<16x8xf32>
    %c0_26 = arith.constant 0 : index
    %c0_27 = arith.constant 0 : index
    %41 = vector.load %arg6[%c0_26, %c0_27] : memref<8x8xf32, #tpu.memory_space<vmem>>, vector<8x8xf32>
    %cst_28 = arith.constant dense<0.000000e+00> : vector<16x8xf32>
    %42 = tpu.matmul %40, %41, %cst_28 {dimension_numbers = #tpu.dot_dimension_numbers<[1], [0], [0], [1], [0, 0, 1, 1], [], []>} : vector<16x8xf32>, vector<8x8xf32>, vector<16x8xf32> -> vector<16x8xf32>
    %43 = arith.truncf %42 : vector<16x8xf32> to vector<16x8xbf16>
    %cst_29 = arith.constant dense<0.000000e+00> : vector<16x8xf32>
    %44 = tpu.matmul %0, %43, %cst_29 {dimension_numbers = #tpu.dot_dimension_numbers<[1], [0], [0], [1], [0, 0, 1, 1], [], []>} : vector<16x16xbf16>, vector<16x8xbf16>, vector<16x8xf32> -> vector<16x8xf32>
    %45 = math.tanh %44 : vector<16x8xf32>
    %46 = tpu.concatenate %18, %27, %36, %45 in 1 : vector<16x8xf32>, vector<16x8xf32>, vector<16x8xf32>, vector<16x8xf32> -> vector<16x32xf32>
    %cst_30 = arith.constant dense<0.000000e+00> : vector<32xf32>
    %47 = vector.multi_reduction <add>, %46, %cst_30 [0] : vector<16x32xf32> to vector<32xf32>
    %48 = vector.shape_cast %47 : vector<32xf32> to vector<1x32xf32>
    %cst_31 = arith.constant 1.600000e+01 : f32
    %49 = vector.broadcast %cst_31 : f32 to vector<1x32xf32>
    %50 = arith.divf %48, %49 : vector<1x32xf32>
    %c0_32 = arith.constant 0 : index
    %c0_33 = arith.constant 0 : index
    %51 = vector.load %arg9[%c0_32, %c0_33] : memref<32x7xf32, #tpu.memory_space<vmem>>, vector<32x7xf32>
    %cst_34 = arith.constant dense<0.000000e+00> : vector<1x7xf32>
    %52 = tpu.matmul %50, %51, %cst_34 {dimension_numbers = #tpu.dot_dimension_numbers<[1], [0], [0], [1], [0, 0, 1, 1], [], []>} : vector<1x32xf32>, vector<32x7xf32>, vector<1x7xf32> -> vector<1x7xf32>
    %c0_35 = arith.constant 0 : index
    %c0_36 = arith.constant 0 : index
    %53 = vector.load %arg10[%c0_35, %c0_36] : memref<1x7xf32, #tpu.memory_space<vmem>>, vector<1x7xf32>
    %54 = arith.addf %52, %53 : vector<1x7xf32>
    %c0_37 = arith.constant 0 : index
    %c0_38 = arith.constant 0 : index
    %55 = vector.load %arg11[%c0_37, %c0_38] : memref<32x7xf32, #tpu.memory_space<vmem>>, vector<32x7xf32>
    %cst_39 = arith.constant dense<0.000000e+00> : vector<1x7xf32>
    %56 = tpu.matmul %50, %55, %cst_39 {dimension_numbers = #tpu.dot_dimension_numbers<[1], [0], [0], [1], [0, 0, 1, 1], [], []>} : vector<1x32xf32>, vector<32x7xf32>, vector<1x7xf32> -> vector<1x7xf32>
    %c0_40 = arith.constant 0 : index
    %c0_41 = arith.constant 0 : index
    %57 = vector.load %arg12[%c0_40, %c0_41] : memref<1x7xf32, #tpu.memory_space<vmem>>, vector<1x7xf32>
    %58 = arith.addf %56, %57 : vector<1x7xf32>
    %59 = math.cos %58 : vector<1x7xf32>
    %60 = arith.mulf %54, %59 : vector<1x7xf32>
    %cst_42 = arith.constant 0.000000e+00 : f32
    %61 = vector.broadcast %cst_42 : f32 to vector<1x7xf32>
    %62 = arith.maximumf %60, %61 : vector<1x7xf32>
    %63 = math.sin %58 : vector<1x7xf32>
    %64 = arith.mulf %54, %63 : vector<1x7xf32>
    %cst_43 = arith.constant 0.000000e+00 : f32
    %65 = vector.broadcast %cst_43 : f32 to vector<1x7xf32>
    %66 = arith.maximumf %64, %65 : vector<1x7xf32>
    %c0_44 = arith.constant 0 : index
    %c0_45 = arith.constant 0 : index
    %67 = vector.load %arg13[%c0_44, %c0_45] : memref<7x32xf32, #tpu.memory_space<vmem>>, vector<7x32xf32>
    %cst_46 = arith.constant dense<0.000000e+00> : vector<1x32xf32>
    %68 = tpu.matmul %62, %67, %cst_46 {dimension_numbers = #tpu.dot_dimension_numbers<[1], [0], [0], [1], [0, 0, 1, 1], [], []>} : vector<1x7xf32>, vector<7x32xf32>, vector<1x32xf32> -> vector<1x32xf32>
    %c0_47 = arith.constant 0 : index
    %c0_48 = arith.constant 0 : index
    %69 = vector.load %arg14[%c0_47, %c0_48] : memref<7x32xf32, #tpu.memory_space<vmem>>, vector<7x32xf32>
    %cst_49 = arith.constant dense<0.000000e+00> : vector<1x32xf32>
    %70 = tpu.matmul %66, %69, %cst_49 {dimension_numbers = #tpu.dot_dimension_numbers<[1], [0], [0], [1], [0, 0, 1, 1], [], []>} : vector<1x7xf32>, vector<7x32xf32>, vector<1x32xf32> -> vector<1x32xf32>
    %71 = arith.addf %68, %70 : vector<1x32xf32>
    %c0_50 = arith.constant 0 : index
    %c0_51 = arith.constant 0 : index
    %72 = vector.load %arg15[%c0_50, %c0_51] : memref<1x32xf32, #tpu.memory_space<vmem>>, vector<1x32xf32>
    %73 = arith.addf %71, %72 : vector<1x32xf32>
    %cst_52 = arith.constant 0.000000e+00 : f32
    %74 = vector.broadcast %cst_52 : f32 to vector<1x32xf32>
    %75 = arith.subf %74, %73 : vector<1x32xf32>
    %76 = math.exp %75 : vector<1x32xf32>
    %cst_53 = arith.constant 1.000000e+00 : f32
    %77 = vector.broadcast %cst_53 : f32 to vector<1x32xf32>
    %78 = arith.addf %77, %76 : vector<1x32xf32>
    %cst_54 = arith.constant 1.000000e+00 : f32
    %79 = vector.broadcast %cst_54 : f32 to vector<1x32xf32>
    %80 = arith.divf %79, %78 : vector<1x32xf32>
    %81 = vector.broadcast %80 : vector<1x32xf32> to vector<16x32xf32>
    %82 = arith.mulf %46, %81 : vector<16x32xf32>
    %83 = arith.addf %82, %7 : vector<16x32xf32>
    %c0_55 = arith.constant 0 : index
    %c0_56 = arith.constant 0 : index
    %84 = vector.load %arg8[%c0_55, %c0_56] : memref<32x128xf32, #tpu.memory_space<vmem>>, vector<32x128xf32>
    %cst_57 = arith.constant dense<0.000000e+00> : vector<16x128xf32>
    %85 = tpu.matmul %83, %84, %cst_57 {dimension_numbers = #tpu.dot_dimension_numbers<[1], [0], [0], [1], [0, 0, 1, 1], [], []>} : vector<16x32xf32>, vector<32x128xf32>, vector<16x128xf32> -> vector<16x128xf32>
    %86 = arith.truncf %85 : vector<16x128xf32> to vector<16x128xbf16>
    %cst_58 = arith.constant dense<0.000000e+00> : vector<16x128xf32>
    %87 = tpu.matmul %0, %86, %cst_58 {dimension_numbers = #tpu.dot_dimension_numbers<[1], [0], [0], [1], [0, 0, 1, 1], [], []>} : vector<16x16xbf16>, vector<16x128xbf16>, vector<16x128xf32> -> vector<16x128xf32>
    %88 = tpu.iota {dimensions = array<i32: 1>} : vector<16x128xi32>
    %c8_i32 = arith.constant 8 : i32
    %89 = vector.broadcast %c8_i32 : i32 to vector<16x128xi32>
    %90 = arith.cmpi slt, %88, %89 : vector<16x128xi32>
    %cst_59 = arith.constant -1.000000e+30 : f32
    %91 = vector.broadcast %cst_59 : f32 to vector<16x128xf32>
    %92 = arith.select %90, %87, %91 : vector<16x128xi1>, vector<16x128xf32>
    %cst_60 = arith.constant dense<0xFF800000> : vector<16xf32>
    %93 = vector.multi_reduction <maximumf>, %92, %cst_60 [1] : vector<16x128xf32> to vector<16xf32>
    %94 = vector.shape_cast %93 : vector<16xf32> to vector<16x1xf32>
    %95 = vector.broadcast %94 : vector<16x1xf32> to vector<16x128xf32>
    %96 = arith.subf %92, %95 : vector<16x128xf32>
    %97 = math.exp %96 : vector<16x128xf32>
    %cst_61 = arith.constant dense<0.000000e+00> : vector<16xf32>
    %98 = vector.multi_reduction <add>, %97, %cst_61 [1] : vector<16x128xf32> to vector<16xf32>
    %99 = vector.shape_cast %98 : vector<16xf32> to vector<16x1xf32>
    %100 = math.log %99 : vector<16x1xf32>
    %101 = vector.broadcast %100 : vector<16x1xf32> to vector<16x128xf32>
    %102 = arith.subf %96, %101 : vector<16x128xf32>
    %c0_62 = arith.constant 0 : index
    %c0_63 = arith.constant 0 : index
    %103 = vector.load %arg16[%c0_62, %c0_63] : memref<16x128xf32, #tpu.memory_space<vmem>>, vector<16x128xf32>
    tpu.vector_store %arg16[%c0_62, %c0_63], %102 {strides = array<i32>} : memref<16x128xf32, #tpu.memory_space<vmem>>, vector<16x128xf32>,
    return
  }
}

</mosaic_0001>

<bundles_post_ra>
// kernel: qgnn_forward.1
= control target key start
LH: loop header
LB: loop body
LE: loop exit
PB: predicated region body
PF: predicated region fallthrough
CT: control target
= control target key end

     0   :  { %vm60_vm0 = vcmask 130048   ;;  %v2155_v5 = vmov 0.0   ;;  %vm2156_vm1 = vmmov 0   ;;  %s2158_s18 = smov 96   ;;  %s2160_s19 = smov 72   ;;  %vm202_vm2 = vcmask 64512   ;;  %s2490_s2 = inlined_call_operand.vmem [shape: f32[16,64], index: 2, kind: input, shape index: {}]   ;;  %s2491_s1 = inlined_call_operand.vmem [shape: f32[16,16], index: 1, kind: input, shape index: {}]   ;;  %s2492_s0 = inlined_call_operand.vmem [shape: bf16[16,16], index: 0, kind: input, shape index: {}]   ;;  %s2493_s3 = inlined_call_operand.vmem [shape: f32[8,8], index: 3, kind: input, shape index: {}]   ;;  %s2494_s7 = inlined_call_operand.vmem [shape: f32[8,8], index: 7, kind: input, shape index: {}]   ;;  %s2495_s4 = inlined_call_operand.vmem [shape: f32[8,8], index: 4, kind: input, shape index: {}]   ;;  %s2496_s5 = inlined_call_operand.vmem [shape: f32[8,8], index: 5, kind: input, shape index: {}]   ;;  %s2497_s6 = inlined_call_operand.vmem [shape: f32[8,8], index: 6, kind: input, shape index: {}]   ;;  %s2498_s9 = inlined_call_operand.vmem [shape: f32[32,7], index: 9, kind: input, shape index: {}]   ;;  %s2499_s11 = inlined_call_operand.vmem [shape: f32[32,7], index: 11, kind: input, shape index: {}]   ;;  %s2500_s14 = inlined_call_operand.vmem [shape: f32[7,32], index: 14, kind: input, shape index: {}]   ;;  %s2501_s12 = inlined_call_operand.vmem [shape: f32[1,7], index: 12, kind: input, shape index: {}]   ;;  %s2502_s10 = inlined_call_operand.vmem [shape: f32[1,7], index: 10, kind: input, shape index: {}]   ;;  %s2503_s13 = inlined_call_operand.vmem [shape: f32[7,32], index: 13, kind: input, shape index: {}]   ;;  %s2504_s8 = inlined_call_operand.vmem [shape: f32[32,128], index: 8, kind: input, shape index: {}]   ;;  %s2505_s15 = inlined_call_operand.vmem [shape: f32[1,32], index: 15, kind: input, shape index: {}]   ;;  %s2506_s16 = inlined_call_operand.vmem [shape: f32[16,128], index: 16, kind: output, shape index: {}]  }
   0x1   :  { %2508 = sst [smem:[#allocation2_spill]] %s2490_s2  ;;  %v56_v2 = vld [vmem:[%s2491_s1] sm:$0xff]  ;;  %v57_v4 = vld [vmem:[%s2491_s1 + $0x8] sm:$0xff]  ;;  %1942 = vmatprep.subr.bf16.mxu1 %v2155_v5  ;;  %1944 = vmatprep.mubr.msk.bf16.mxu1 %vm2156_vm1, %v2155_v5  ;;  %vm1121_vm3 = vcmask 195584   ;;  %vm1124_vm4 = vcmask 261120   ;;  %vm1506_vm5 = vcmask 1046528  }
   0x2   :  { %s2509_s23 = sld [smem:[#allocation2_spill]]  ;;  %1939 = vmatprep.mubr.msk.f32.mxu0 %vm60_vm0, %v56_v2  ;;  %v2276_v9 = vld [vmem:[%s2492_s0] sm:$0xff]   ;;  %s2157_s0 = smov 88  }
   0x3   :  { %v195_v10 = vld [vmem:[%s2493_s3] sm:$0xff]  ;;  %s2159_s3 = smov 80  }
   0x4   :  { %v2305_v22 = vld [vmem:[%s2494_s7] sm:$0xff] }
   0x5   :  { %v457_v29 = vld [vmem:[%s2495_s4] sm:$0xff]  ;;  %s2161_s4 = smov 8  }
   0x6   :  { %v714_v50 = vld [vmem:[%s2496_s5] sm:$0xff]  ;;  %s2162_s5 = smov 16  }
   0x8   :  { %v58_v0 = vld [vmem:[%s2509_s23] sm:$0xff]  ;;  %v59_v1 = vld [vmem:[%s2509_s23 + $0x8] sm:$0xff] }
   0x9   :  { %v2074_v3 = vpack.c.bf16 %v59_v1, %v58_v0 }
   0xb   :  { %2075 = vmatprep.subr.bf16.mxu0 %v2074_v3 }
   0xc   :  { %2077 = vmatpush3.bf16.msra.mxu0 %v2074_v3 }
   0xd   :  { %1948 = vmatprep.subr.mxu0 %v195_v10 }
   0xf   :  { %1940 = vmatmul.mubr.msk.f32.vlgmr.msra.gmra.mrb[0].mxu0 %vm60_vm0, %v57_v4 }
  0x10   :  { %1949 = vmatpush3.msra.mxu0 %v195_v10 }
  0x11   :  { %1953 = vmatprep.subr.bf16.mxu0 %v2155_v5 }
  0xe2   :  { %v1941_v6 = vpop.f32.mrb[0].mxu0 }
  0xe3   :  { %v133_v7 = vpop.f32.mrb[1].mxu0 }
  0xe4   :  { %v142_v8 = vpack.c.bf16 %v1941_v6, %v133_v7 }
  0xe6   :  { %1943 = vmatpush3.bf16.msra.mxu1 %v142_v8  ;;  %v971_v8 = vld [vmem:[%s2497_s6] sm:$0xff] }
  0xe7   :  { %1959 = vmatprep.subr.mxu1 %v2305_v22 }
  0xe9   :  { %1945 = vmatmul.mubr.msk.bf16.vlgmr.msra.gmra.mrb[0].mxu1 %vm60_vm0, %v2276_v9 }
  0xea   :  { %1960 = vmatpush3.msra.mxu1 %v2305_v22 }
  0xeb   :  { %1964 = vmatprep.subr.bf16.mxu1 %v2155_v5 }
 0x1bc   :  { %v185_v11 = vpop.f32.mrb[0].mxu1 }
 0x1bd   :  { %2119 = vtanh.f32 %v185_v11  ;;  %v1946_v12 = vpop.f32.mrb[1].mxu1 }
 0x1be   :  { %v188_v13 = vpop.f32.mrb[2].mxu1 }
 0x1bf   :  { %v1947_v14 = vpop.f32.mrb[3].mxu1  ;;  %2121 = vtanh.f32 %v188_v13 }
 0x1c7   :  { %v2284_v15 = vpop.eup %2119 }
 0x1c8   :  { %449 = vrot.lane.b32.xlu1 %v2284_v15, %s2157_s0  ;;  %198 = vrot.lane.b32.xlu0 %v2284_v15, %s2158_s18 }
 0x1c9   :  { %v2288_v16 = vpop.eup %2121 }
 0x1cc   :  { %451 = vrot.lane.b32.xlu1 %v2288_v16, %s2157_s0  ;;  %200 = vrot.lane.b32.xlu0 %v2288_v16, %s2158_s18  ;;  %s2164_s0 = smov 24  }
 0x1d0   :  { %708 = vrot.lane.b32.xlu1 %v2288_v16, %s2159_s3  ;;  %706 = vrot.lane.b32.xlu0 %v2284_v15, %s2159_s3 }
 0x1d4   :  { %965 = vrot.lane.b32.xlu1 %v2288_v16, %s2160_s19  ;;  %963 = vrot.lane.b32.xlu0 %v2284_v15, %s2160_s19 }
 0x23a   :  { %v199_v17 = vpop.permute.xlu0 %198  ;;  %v450_v33 = vpop.permute.xlu1 %449 }
 0x23b   :  { %1950 = vmatprep.mubr.msk.f32.mxu0 %vm202_vm2, %v199_v17 }
 0x23e   :  { %v201_v18 = vpop.permute.xlu0 %200  ;;  %v452_v37 = vpop.permute.xlu1 %451 }
 0x23f   :  { %1951 = vmatmul.mubr.msk.f32.vlgmr.msra.gmra.mrb[2].mxu0 %vm202_vm2, %v201_v18 }
 0x240   :  { %1955 = vmatprep.mubr.msk.bf16.mxu0 %vm2156_vm1, %v2155_v5 }
 0x242   :  { %v707_v54 = vpop.permute.xlu0 %706  ;;  %v709_v58 = vpop.permute.xlu1 %708 }
 0x246   :  { %v964_v13 = vpop.permute.xlu0 %963 }
 0x312   :  { %v1952_v19 = vpop.f32.mrb[2].mxu0 }
 0x313   :  { %v273_v20 = vpop.f32.mrb[3].mxu0 }
 0x314   :  { %v282_v21 = vpack.c.bf16 %v1952_v19, %v273_v20  ;;  %v966_v19 = vpop.permute.xlu1 %965 }
 0x316   :  { %1954 = vmatpush3.bf16.msra.mxu0 %v282_v21 }
 0x317   :  { %1970 = vmatprep.subr.mxu0 %v457_v29 }
 0x319   :  { %1956 = vmatmul.mubr.msk.bf16.vlgmr.msra.gmra.mrb[4].mxu0 %vm60_vm0, %v2276_v9 }
 0x31a   :  { %1971 = vmatpush3.msra.mxu0 %v457_v29 }
 0x31b   :  { %1975 = vmatprep.subr.bf16.mxu0 %v2155_v5 }
 0x3ec   :  { %v317_v23 = vpop.f32.mrb[4].mxu0 }
 0x3ed   :  { %2123 = vtanh.f32 %v317_v23  ;;  %v1957_v24 = vpop.f32.mrb[5].mxu0 }
 0x3ee   :  { %v320_v25 = vpop.f32.mrb[6].mxu0 }
 0x3ef   :  { %2125 = vtanh.f32 %v320_v25  ;;  %v1958_v26 = vpop.f32.mrb[7].mxu0 }
 0x3f7   :  { %v2310_v27 = vpop.eup %2123 }
 0x3f8   :  { %1961 = vmatprep.mubr.msk.f32.mxu1 %vm202_vm2, %v2310_v27 }
 0x3f9   :  { %v2314_v28 = vpop.eup %2125 }
 0x3fa   :  { %1962 = vmatmul.mubr.msk.f32.vlgmr.msra.gmra.mrb[4].mxu1 %vm202_vm2, %v2314_v28 }
 0x3fb   :  { %1966 = vmatprep.mubr.msk.bf16.mxu1 %vm2156_vm1, %v2155_v5 }
 0x4cd   :  { %v1963_v30 = vpop.f32.mrb[4].mxu1 }
 0x4ce   :  { %v398_v31 = vpop.f32.mrb[5].mxu1 }
 0x4cf   :  { %v407_v32 = vpack.c.bf16 %v1963_v30, %v398_v31 }
 0x4d1   :  { %1965 = vmatpush3.bf16.msra.mxu1 %v407_v32  ;;  %v1136_v32 = vld [vmem:[%s2498_s9] sm:$0xff] }
 0x4d2   :  { %1981 = vmatprep.subr.mxu1 %v2305_v22 }
 0x4d4   :  { %1967 = vmatmul.mubr.msk.bf16.vlgmr.msra.gmra.mrb[8].mxu1 %vm60_vm0, %v2276_v9 }
 0x4d5   :  { %1982 = vmatpush3.msra.mxu1 %v2305_v22 }
 0x4d6   :  { %1986 = vmatprep.subr.bf16.mxu1 %v2155_v5 }
 0x5a7   :  { %v442_v34 = vpop.f32.mrb[8].mxu1 }
 0x5a8   :  { %v455_v35 = vmul.f32 %v450_v33, %v442_v34  ;;  %v1968_v36 = vpop.f32.mrb[9].mxu1  ;;  %v1137_v33 = vld [vmem:[%s2498_s9 + $0x8] sm:$0xff]  ;;  %v1214_v34 = vld [vmem:[%s2499_s11] sm:$0xff] }
 0x5a9   :  { %v445_v38 = vpop.f32.mrb[10].mxu1  ;;  %v1215_v36 = vld [vmem:[%s2499_s11 + $0x8] sm:$0xff] }
 0x5aa   :  { %v456_v39 = vmul.f32 %v452_v37, %v445_v38  ;;  %v1969_v40 = vpop.f32.mrb[11].mxu1  ;;  %1972 = vmatprep.mubr.msk.f32.mxu0 %vm202_vm2, %v455_v35  ;;  %v2079_v35 = vpack.c.bf16 %v1137_v33, %v1136_v32  ;;  %v2163_v38 = vmov 0.0|0.0  }
 0x5ac   :  { %1973 = vmatmul.mubr.msk.f32.vlgmr.msra.gmra.mrb[8].mxu0 %vm202_vm2, %v456_v39  ;;  %v2085_v39 = vpack.c.bf16 %v1215_v36, %v1214_v34  ;;  %v2168_v34 = vmov 2102212464  }
 0x5ad   :  { %1977 = vmatprep.mubr.msk.bf16.mxu0 %vm2156_vm1, %v2155_v5 }
 0x67f   :  { %v1974_v41 = vpop.f32.mrb[8].mxu0 }
 0x680   :  { %v530_v42 = vpop.f32.mrb[9].mxu0 }
 0x681   :  { %v539_v43 = vpack.c.bf16 %v1974_v41, %v530_v42  ;;  %v1138_v41 = vld [vmem:[%s2498_s9 + $0x10] sm:$0xff]  ;;  %v1139_v42 = vld [vmem:[%s2498_s9 + $0x18] sm:$0xff] }
 0x683   :  { %1976 = vmatpush3.bf16.msra.mxu0 %v539_v43  ;;  %v1216_v43 = vld [vmem:[%s2499_s11 + $0x10] sm:$0xff] }
 0x684   :  { %1992 = vmatprep.subr.mxu0 %v714_v50 }
 0x686   :  { %1978 = vmatmul.mubr.msk.bf16.vlgmr.msra.gmra.mrb[12].mxu0 %vm60_vm0, %v2276_v9 }
 0x687   :  { %1993 = vmatpush3.msra.mxu0 %v714_v50 }
 0x688   :  { %1997 = vmatprep.subr.bf16.mxu0 %v2155_v5 }
 0x759   :  { %v574_v44 = vpop.f32.mrb[12].mxu0 }
 0x75a   :  { %2127 = vtanh.f32 %v574_v44  ;;  %v1979_v45 = vpop.f32.mrb[13].mxu0  ;;  %v2082_v44 = vpack.c.bf16 %v1139_v42, %v1138_v41 }
 0x75b   :  { %v577_v46 = vpop.f32.mrb[14].mxu0  ;;  %v1217_v45 = vld [vmem:[%s2499_s11 + $0x18] sm:$0xff] }
 0x75c   :  { %2129 = vtanh.f32 %v577_v46  ;;  %v1980_v47 = vpop.f32.mrb[15].mxu0  ;;  %v2088_v46 = vpack.c.bf16 %v1217_v45, %v1216_v43 }
 0x764   :  { %v2128_v48 = vpop.eup %2127 }
 0x765   :  { %1097 = vrot.lane.b32.xlu0 %v2128_v48, %s2161_s4  ;;  %1983 = vmatprep.mubr.msk.f32.mxu1 %vm202_vm2, %v2128_v48 }
 0x766   :  { %v2130_v49 = vpop.eup %2129 }
 0x767   :  { %1099 = vrot.lane.b32.xlu1 %v2130_v49, %s2161_s4  ;;  %1984 = vmatmul.mubr.msk.f32.vlgmr.msra.gmra.mrb[6].mxu1 %vm202_vm2, %v2130_v49 }
 0x768   :  { %1988 = vmatprep.mubr.msk.bf16.mxu1 %vm2156_vm1, %v2155_v5 }
 0x7d7   :  { %v1098_v47 = vpop.permute.xlu0 %1097 }
 0x7d9   :  { %v1100_v48 = vpop.permute.xlu1 %1099 }
 0x83a   :  { %v1985_v51 = vpop.f32.mrb[6].mxu1 }
 0x83b   :  { %v655_v52 = vpop.f32.mrb[7].mxu1 }
 0x83c   :  { %v664_v53 = vpack.c.bf16 %v1985_v51, %v655_v52  ;;  %v1117_v51 = vsel %vm202_vm2, %v2310_v27, %v1098_v47 }
 0x83e   :  { %1987 = vmatpush3.bf16.msra.mxu1 %v664_v53 }
 0x83f   :  { %2003 = vmatprep.subr.mxu1 %v2305_v22 }
 0x841   :  { %1989 = vmatmul.mubr.msk.bf16.vlgmr.msra.gmra.mrb[12].mxu1 %vm60_vm0, %v2276_v9 }
 0x842   :  { %2004 = vmatpush3.msra.mxu1 %v2305_v22 }
 0x843   :  { %2008 = vmatprep.subr.bf16.mxu1 %v2155_v5 }
 0x914   :  { %v699_v55 = vpop.f32.mrb[12].mxu1 }
 0x915   :  { %v712_v56 = vmul.f32 %v707_v54, %v699_v55  ;;  %v1990_v57 = vpop.f32.mrb[13].mxu1  ;;  %v1118_v54 = vsel %vm202_vm2, %v2314_v28, %v1100_v48 }
 0x916   :  { %v702_v59 = vpop.f32.mrb[14].mxu1 }
 0x917   :  { %v713_v60 = vmul.f32 %v709_v58, %v702_v59  ;;  %v1991_v61 = vpop.f32.mrb[15].mxu1  ;;  %1994 = vmatprep.mubr.msk.f32.mxu0 %vm202_vm2, %v712_v56 }
 0x919   :  { %1995 = vmatmul.mubr.msk.f32.vlgmr.msra.gmra.mrb[10].mxu0 %vm202_vm2, %v713_v60 }
 0x91a   :  { %1999 = vmatprep.mubr.msk.bf16.mxu0 %vm2156_vm1, %v2155_v5 }
 0x9ec   :  { %v1996_v62 = vpop.f32.mrb[10].mxu0 }
 0x9ed   :  { %v787_v63 = vpop.f32.mrb[11].mxu0 }
 0x9ee   :  { %v796_v0 = vpack.c.bf16 %v1996_v62, %v787_v63 }
 0x9f0   :  { %1998 = vmatpush3.bf16.msra.mxu0 %v796_v0 }
 0x9f1   :  { %2014 = vmatprep.subr.mxu0 %v971_v8 }
 0x9f3   :  { %2000 = vmatmul.mubr.msk.bf16.vlgmr.msra.gmra.mrb[16].mxu0 %vm60_vm0, %v2276_v9 }
 0x9f4   :  { %2015 = vmatpush3.msra.mxu0 %v971_v8 }
 0x9f5   :  { %2019 = vmatprep.subr.bf16.mxu0 %v2155_v5 }
 0xac6   :  { %v831_v1 = vpop.f32.mrb[16].mxu0 }
 0xac7   :  { %2131 = vtanh.f32 %v831_v1  ;;  %v2001_v2 = vpop.f32.mrb[17].mxu0 }
 0xac8   :  { %v834_v3 = vpop.f32.mrb[18].mxu0 }
 0xac9   :  { %2133 = vtanh.f32 %v834_v3  ;;  %v2002_v4 = vpop.f32.mrb[19].mxu0  ;;  %v1501_v3 = vld [vmem:[%s2500_s14] sm:$0x7f] }
 0xaca   :  { %v1218_v4 = vld [vmem:[%s2501_s12] sm:$0x1] }
 0xad1   :  { %v2132_v6 = vpop.eup %2131 }
 0xad2   :  { %1103 = vrot.lane.b32.xlu0 %v2132_v6, %s2162_s5  ;;  %2005 = vmatprep.mubr.msk.f32.mxu1 %vm202_vm2, %v2132_v6 }
 0xad3   :  { %v2134_v7 = vpop.eup %2133 }
 0xad4   :  { %1105 = vrot.lane.b32.xlu1 %v2134_v7, %s2162_s5  ;;  %2006 = vmatmul.mubr.msk.f32.vlgmr.msra.gmra.mrb[16].mxu1 %vm202_vm2, %v2134_v7 }
 0xad5   :  { %2010 = vmatprep.mubr.msk.bf16.mxu1 %vm2156_vm1, %v2155_v5 }
 0xb44   :  { %v1104_v49 = vpop.permute.xlu0 %1103 }
 0xb45   :  { %v1119_v52 = vsel %vm60_vm0, %v1117_v51, %v1104_v49 }
 0xb46   :  { %v1106_v50 = vpop.permute.xlu1 %1105 }
 0xb47   :  { %v1120_v56 = vsel %vm60_vm0, %v1118_v54, %v1106_v50 }
 0xba7   :  { %v2007_v10 = vpop.f32.mrb[16].mxu1 }
 0xba8   :  { %v912_v11 = vpop.f32.mrb[17].mxu1 }
 0xba9   :  { %v921_v12 = vpack.c.bf16 %v2007_v10, %v912_v11 }
 0xbab   :  { %2009 = vmatpush3.bf16.msra.mxu1 %v921_v12 }
 0xbac   :  { %2078 = vmatprep.subr.bf16.mxu1 %v2163_v38 }
 0xbae   :  { %2011 = vmatmul.mubr.msk.bf16.vlgmr.msra.gmra.mrb[20].mxu1 %vm60_vm0, %v2276_v9 }
 0xbaf   :  { %2033 = vmatprep.mubr.msk.f32.mxu1 %vm2156_vm1, %v2155_v5  ;;  %2080 = vmatpush3.bf16.msra.mxu1 %v2079_v35 }
 0xbb0   :  { %2081 = vmatprep.subr.bf16.mxu1 %v2163_v38 }
 0xbb3   :  { %2083 = vmatpush3.bf16.msra.mxu1 %v2082_v44 }
 0xbb4   :  { %2047 = vmatprep.subr.mxu1 %v2155_v5 }
 0xc81   :  { %v956_v14 = vpop.f32.mrb[20].mxu1 }
 0xc82   :  { %v969_v17 = vmul.f32 %v964_v13, %v956_v14  ;;  %v2012_v18 = vpop.f32.mrb[21].mxu1 }
 0xc83   :  { %v959_v20 = vpop.f32.mrb[22].mxu1 }
 0xc84   :  { %v970_v21 = vmul.f32 %v966_v19, %v959_v20  ;;  %v2013_v22 = vpop.f32.mrb[23].mxu1  ;;  %2016 = vmatprep.mubr.msk.f32.mxu0 %vm202_vm2, %v969_v17 }
 0xc86   :  { %2017 = vmatmul.mubr.msk.f32.vlgmr.msra.gmra.mrb[20].mxu0 %vm202_vm2, %v970_v21 }
 0xc87   :  { %2021 = vmatprep.mubr.msk.bf16.mxu0 %vm2156_vm1, %v2155_v5 }
 0xd59   :  { %v2018_v23 = vpop.f32.mrb[20].mxu0 }
 0xd5a   :  { %v1044_v24 = vpop.f32.mrb[21].mxu0 }
 0xd5b   :  { %v1053_v25 = vpack.c.bf16 %v2018_v23, %v1044_v24  ;;  %v2165_v24 = vmov 683565275  }
 0xd5d   :  { %2020 = vmatpush3.bf16.msra.mxu0 %v1053_v25 }
 0xd5e   :  { %2084 = vmatprep.subr.bf16.mxu0 %v2163_v38 }
 0xd60   :  { %2022 = vmatmul.mubr.msk.bf16.vlgmr.msra.gmra.mrb[24].mxu0 %vm60_vm0, %v2276_v9 }
 0xd61   :  { %2044 = vmatprep.mubr.msk.f32.mxu0 %vm2156_vm1, %v2155_v5  ;;  %2086 = vmatpush3.bf16.msra.mxu0 %v2085_v39 }
 0xd62   :  { %2087 = vmatprep.subr.bf16.mxu0 %v2163_v38 }
 0xd65   :  { %2089 = vmatpush3.bf16.msra.mxu0 %v2088_v46 }
 0xe33   :  { %v1088_v26 = vpop.f32.mrb[24].mxu0 }
 0xe34   :  { %2135 = vtanh.f32 %v1088_v26  ;;  %v2023_v29 = vpop.f32.mrb[25].mxu0  ;;  %v2166_v26 = vmov 2475754826  }
 0xe35   :  { %v1091_v30 = vpop.f32.mrb[26].mxu0 }
 0xe36   :  { %2137 = vtanh.f32 %v1091_v30  ;;  %v2024_v31 = vpop.f32.mrb[27].mxu0 }
 0xe37   :  { %v2167_v31 = vmov 2131351028  }
 0xe3e   :  { %v2136_v37 = vpop.eup %2135 }
 0xe3f   :  { %1111 = vrot.lane.b32.xlu0 %v2136_v37, %s2164_s0  ;;  %v2169_v37 = vmov 920167782  }
 0xe40   :  { %v2138_v40 = vpop.eup %2137 }
 0xe41   :  { %1113 = vrot.lane.b32.xlu1 %v2138_v40, %s2164_s0  ;;  %v2170_v40 = vmov 1326507024  }
 0xeb1   :  { %v1112_v53 = vpop.permute.xlu0 %1111 }
 0xeb2   :  { %v2404_v55 = vsel %vm1121_vm3, %v1119_v52, %v1112_v53 }
 0xeb3   :  { %v1114_v57 = vpop.permute.xlu1 %1113  ;;  %v1125_v59 = vsel %vm1124_vm4, %v2404_v55, 0.0 }
 0xeb4   :  { %v2407_v58 = vsel %vm1121_vm3, %v1120_v56, %v1114_v57 }
 0xeb5   :  { %v1126_v27 = vsel %vm1124_vm4, %v2407_v58, 0.0 }
 0xeb6   :  { %v1127_v60 = vadd.f32 %v1126_v27, %v1125_v59 }
 0xeb8   :  { %v1128_v61 = vrot.slane %v1127_v60, 4 }
 0xeba   :  { %v1129_v62 = vadd.f32 %v1128_v61, %v1127_v60 }
 0xebc   :  { %v1130_v63 = vrot.slane %v1129_v62, 2 }
 0xebe   :  { %v1131_v0 = vadd.f32 %v1130_v63, %v1129_v62 }
 0xec0   :  { %v1132_v28 = vrot.slane %v1131_v0, 1 }
 0xec2   :  { %v1133_v1 = vadd.f32 %v1132_v28, %v1131_v0 }
 0xec4   :  { %v1135_v2 = vmul.f32 0.0625, %v1133_v1 }
 0xec6   :  { %2034 = vmatmul.mubr.msk.f32.vlgmr.msra.gmra.mrb[18].mxu1 %vm1124_vm4, %v1135_v2  ;;  %2045 = vmatmul.mubr.msk.f32.vlgmr.msra.gmra.mrb[22].mxu0 %vm1124_vm4, %v1135_v2 }
 0xec7   :  { %2049 = vmatprep.mubr.msk.f32.mxu1 %vm2156_vm1, %v2155_v5  ;;  %2048 = vmatpush3.msk.msra.mxu1 %vm1506_vm5, %v1501_v3 }
 0xec8   :  { %2052 = vmatprep.subr.mxu1 %v2155_v5 }
 0xf99   :  { %v2425_v6 = vpop.f32.mrb[18].mxu1  ;;  %v1285_v7 = vpop.f32.mrb[22].mxu0 }
 0xf9a   :  { %v2427_v8 = vadd.f32 %v1285_v7, %v1218_v4  ;;  %v2035_v10 = vpop.f32.mrb[19].mxu1  ;;  %v2046_v11 = vpop.f32.mrb[23].mxu0 }
 0xf9c   :  { %v1292_v12 = vand.u32 2139095040, %v2427_v8  ;;  %v1289_v18 = vand.u32 2147483647, %v2427_v8  ;;  %vm1291_vm13 = vcmp.lt.s32.totalorder %v2427_v8, 0 }
 0xf9e   :  { %v1293_v13 = vshrl.u32 %v1292_v12, 23  ;;  %v1296_v21 = vand.u32 8388607, %v1289_v18  ;;  %vm1290_vm14 = vcmp.le.f32.partialorder %v1289_v18, 0.7853982 }
 0xfa0   :  { %v1857_v14 = vadd.s32 4294967169, %v1293_v13  ;;  %v1297_v42 = vor.u32 8388608, %v1296_v21 }
 0xfa2   :  { %v1299_v17 = vadd.s32 1, %v1857_v14  ;;  %v1337_v57 = vshll.u32 %v1297_v42, 8 }
 0xfa4   :  { %vm1300_vm6 = vcmp.gt.s32.totalorder %v1299_v17, 0 }
 0xfa5   :  { %v1301_v19 = vsel %vm1300_vm6, %v1299_v17, 0 }
 0xfa6   :  { %v1303_v20 = vand.u32 31, %v1301_v19  ;;  %v1302_v23 = vshrl.u32 %v1301_v19, 5 }
 0xfa8   :  { %v1304_v22 = vsub.s32 32, %v1303_v20  ;;  %v1306_v25 = vshll.u32 %v2165_v24, %v1303_v20  ;;  %v1309_v29 = vshll.u32 %v2166_v26, %v1303_v20  ;;  %v1312_v33 = vshll.u32 %v2167_v31, %v1303_v20 }
 0xfa9   :  { %v1315_v36 = vshll.u32 %v2168_v34, %v1303_v20  ;;  %v1318_v39 = vshll.u32 %v2169_v37, %v1303_v20  ;;  %vm1321_vm7 = vcmp.lt.s32.totalorder %v1302_v23, 1  ;;  %vm1324_vm8 = vcmp.lt.s32.totalorder %v1302_v23, 4 }
 0xfaa   :  { %v1307_v30 = vshrl.u32 %v2166_v26, %v1304_v22  ;;  %v1310_v32 = vshrl.u32 %v2167_v31, %v1304_v22  ;;  %v1313_v35 = vshrl.u32 %v2168_v34, %v1304_v22  ;;  %v1316_v38 = vshrl.u32 %v2169_v37, %v1304_v22 }
 0xfab   :  { %v1319_v41 = vshrl.u32 %v2170_v40, %v1304_v22  ;;  %v1305_v51 = vshrl.u32 %v2165_v24, %v1304_v22  ;;  %vm1323_vm9 = vcmp.lt.s32.totalorder %v1302_v23, 3  ;;  %vm1322_vm10 = vcmp.lt.s32.totalorder %v1302_v23, 2 }
 0xfac   :  { %v1308_v43 = vor.u32 %v1307_v30, %v1306_v25  ;;  %v1311_v44 = vor.u32 %v1310_v32, %v1309_v29  ;;  %v1314_v45 = vor.u32 %v1313_v35, %v1312_v33  ;;  %v1317_v46 = vor.u32 %v1316_v38, %v1315_v36 }
 0xfad   :  { %v1320_v47 = vor.u32 %v1319_v41, %v1318_v39 }
 0xfae   :  { %v1326_v48 = vsel %vm1324_vm8, %v1314_v45, 2102212464  ;;  %v1329_v49 = vsel %vm1321_vm7, %v1308_v43, %v1311_v44  ;;  %v1333_v50 = vsel %vm1321_vm7, %v1311_v44, %v1314_v45  ;;  %v1330_v52 = vsel %vm1324_vm8, %v1317_v46, 920167782 }
 0xfaf   :  { %v1334_v53 = vsel %vm1324_vm8, %v1320_v47, 1326507024  ;;  %v1331_v54 = vsel %vm1323_vm9, %v1314_v45, %v1330_v52  ;;  %v1325_v59 = vsel %vm1321_vm7, %v1305_v51, %v1308_v43  ;;  %v1327_v27 = vsel %vm1323_vm9, %v1311_v44, %v1326_v48  ;;  %v1140_v48 = vld [vmem:[%s2502_s10] sm:$0x1] }
 0xfb0   :  { %v1335_v56 = vsel %vm1323_vm9, %v1317_v46, %v1334_v53  ;;  %v1332_v60 = vsel %vm1322_vm10, %v1329_v49, %v1331_v54  ;;  %v1328_v1 = vsel %vm1322_vm10, %v1325_v59, %v1327_v27  ;;  %v1211_v53 = vadd.f32 %v2425_v6, %v1140_v48 }
 0xfb1   :  { %v1336_v61 = vsel %vm1322_vm10, %v1333_v50, %v1335_v56  ;;  %v2436_v0 = vmul.u32.u64.low %v1337_v57, %v1332_v60  ;;  %v2437_v28 = vmul.u32.u64.high %v1337_v57, %v1332_v60, %v2436_v0  ;;  %v1344_v3 = vmul.u32 %v1337_v57, %v1328_v1  ;;  %v1675_v1 = vld [vmem:[%s2504_s8 + $0x18] sm:$0xff] }
 0xfb2   :  { %v2433_v62 = vmul.u32.u64.low %v1337_v57, %v1336_v61  ;;  %v2434_v63 = vmul.u32.u64.high %v1337_v57, %v1336_v61, %v2433_v62  ;;  %vm1381_vm9 = vweird.f32 %v2427_v8  ;;  %vm1502_vm10 = vcmask 56320  }
 0xfb3   :  { %v1347_v2 = vadd.s32 1, %v2437_v28  ;;  %v1500_v62 = vld [vmem:[%s2503_s13] sm:$0x7f] }
 0xfb4   :  { %vm1346_vm11 = vc.u32 %v2434_v63, %v2436_v0  ;;  %v1345_v22 = vadd.s32 %v2436_v0, %v2434_v63  ;;  %v1673_v63 = vld [vmem:[%s2504_s8 + $0x8] sm:$0xff]  ;;  %v1674_v0 = vld [vmem:[%s2504_s8 + $0x10] sm:$0xff] }
 0xfb5   :  { %v1348_v4 = vsel %vm1346_vm11, %v1347_v2, %v2437_v28  ;;  %v2094_v2 = vpack.c.bf16 %v1675_v1, %v1674_v0 }
 0xfb6   :  { %v1349_v7 = vadd.s32 %v1348_v4, %v1344_v3 }
 0xfb8   :  { %v1350_v10 = vadd.s32 536870912, %v1349_v7 }
 0xfba   :  { %v1351_v11 = vshrl.u32 %v1350_v10, 30 }
 0xfbc   :  { %v1352_v12 = vshll.u32 %v1351_v11, 30  ;;  %v1375_v36 = vsub.s32 4, %v1351_v11 }
 0xfbe   :  { %v1353_v13 = vsub.s32 %v1349_v7, %v1352_v12  ;;  %v1376_v39 = vsel %vm1291_vm13, %v1375_v36, %v1351_v11  ;;  %v1656_v7 = vld [vmem:[%s2505_s15] sm:$0x1] }
 0xfbf   :  { %v1378_v41 = vsel %vm1290_vm14, 0, %v1376_v39 }
 0xfc0   :  { %v1355_v14 = vsub.s32 0, %v1353_v13  ;;  %v1487_v42 = vadd.s32 3, %v1378_v41  ;;  %v1382_v43 = vand.u32 3, %v1378_v41 }
 0xfc2   :  { %v1858_v17 = vmin.u32 %v1355_v14, %v1353_v13  ;;  %v1488_v44 = vand.u32 3, %v1487_v42  ;;  %vm1387_vm2 = vcmp.eq.s32.totalorder %v1382_v43, 2  ;;  %vm1384_vm6 = vcmp.eq.s32.totalorder %v1382_v43, 0 }
 0xfc3   :  { %vm1383_vm8 = vcmp.lt.s32.totalorder %v1382_v43, 2 }
 0xfc4   :  { %v1357_v19 = vclz %v1858_v17  ;;  %vm1493_vm15 = vcmp.eq.s32.totalorder %v1488_v44, 2  ;;  %vm1490_vm3 = vcmp.eq.s32.totalorder %v1488_v44, 0  ;;  %vm1489_vm7 = vcmp.lt.s32.totalorder %v1488_v44, 2 }
 0xfc6   :  { %v1859_v20 = vadd.s32 4294967294, %v1357_v19 }
 0xfc8   :  { %vm1860_vm12 = vcmp.lt.s32.totalorder %v1859_v20, 0 }
 0xfc9   :  { %v1360_v21 = vsel %vm1860_vm12, 0, %v1859_v20  ;;  %v1664_v20 = vlaneseq }
 0xfca   :  { %v1361_v23 = vsub.s32 32, %v1360_v21  ;;  %v1365_v24 = vsub.s32 4294967266, %v1360_v21  ;;  %v1362_v25 = vshll.u32 %v1353_v13, %v1360_v21 }
 0xfcb   :  { %v1665_v21 = vshrl.u32 %v1664_v20, 7 }
 0xfcc   :  { %v1363_v26 = vshrl.u32 %v1345_v22, %v1361_v23  ;;  %v1366_v29 = vadd.s32 127, %v1365_v24 }
 0xfcd   :  { %v1666_v22 = vsub.s32 0, %v1665_v21 }
 0xfce   :  { %v1364_v30 = vor.u32 %v1363_v26, %v1362_v25  ;;  %v1367_v31 = vshll.u32 %v1366_v29, 23 }
 0xfd0   :  { %v1368_v32 = vor.u32 4788187, %v1367_v31  ;;  %v1371_v34 = vcvt.s32.f32 %v1364_v30 }
 0xfd2   :  { %v1369_v33 = vand.u32 2147483647, %v1368_v32 }
 0xfd4   :  { %v1372_v35 = vmul.f32 %v1371_v34, %v1369_v33  ;;  %v1800_v34 = vand.u32 127, %v1664_v20 }
 0xfd6   :  { %v1373_v37 = vxor.u32 2147483648, %v1372_v35 }
 0xfd8   :  { %v1374_v38 = vsel %vm1291_vm13, %v1373_v37, %v1372_v35 }
 0xfd9   :  { %v1377_v40 = vsel %vm1290_vm14, %v2427_v8, %v1374_v38  ;;  %v1672_v8 = vld [vmem:[%s2504_s8] sm:$0xff] }
 0xfda   :  { %2139 = vcosq.f32 %v1377_v40  ;;  %v2090_v28 = vpack.c.bf16 %v1673_v63, %v1672_v8 }
 0xfdb   :  { %2141 = vsinq.f32 %v1377_v40 }
 0xfdc   :  { %2091 = vmatprep.subr.bf16.mxu0 %v2090_v28 }
 0xfdd   :  { %2093 = vmatpush3.bf16.msra.mxu0 %v2090_v28 }
 0xfde   :  { %2095 = vmatprep.subr.bf16.mxu0 %v2094_v2 }
 0xfe1   :  { %2097 = vmatpush3.bf16.msra.mxu0 %v2094_v2 }
 0xfe4   :  { %v2140_v45 = vpop.eup %2139 }
 0xfe5   :  { %v2142_v46 = vpop.eup %2141  ;;  %v1388_v47 = vxor.u32 2147483648, %v2140_v45 }
 0xfe6   :  { %v1385_v49 = vxor.u32 2147483648, %v2142_v46 }
 0xfe7   :  { %v1495_v18 = vsel %vm1493_vm15, %v1388_v47, %v2142_v46  ;;  %v1389_v50 = vsel %vm1387_vm2, %v1388_v47, %v2142_v46 }
 0xfe8   :  { %v1492_v51 = vsel %vm1490_vm3, %v2140_v45, %v1385_v49  ;;  %v1386_v52 = vsel %vm1384_vm6, %v2140_v45, %v1385_v49 }
 0xfe9   :  { %v1496_v54 = vsel %vm1489_vm7, %v1492_v51, %v1495_v18  ;;  %v1390_v56 = vsel %vm1383_vm8, %v1386_v52, %v1389_v50 }
 0xfea   :  { %v1497_v57 = vsel %vm1381_vm9, nan, %v1496_v54  ;;  %v1391_v59 = vsel %vm1381_vm9, nan, %v1390_v56 }
 0xfeb   :  { %v1498_v27 = vmul.f32 %v1497_v57, %v1211_v53  ;;  %v1392_v60 = vmul.f32 %v1391_v59, %v1211_v53 }
 0xfed   :  { %v1499_v61 = vmax.f32 %v1498_v27, 0.0  ;;  %v1393_v6 = vmax.f32 %v1392_v60, 0.0 }
 0xfef   :  { %2050 = vmatmul.mubr.msk.f32.vlgmr.msra.gmra.mrb[24].mxu1 %vm1502_vm10, %v1499_v61 }
 0xff0   :  { %2053 = vmatpush3.msk.msra.mxu1 %vm1506_vm5, %v1500_v62  ;;  %2054 = vmatprep.mubr.msk.f32.mxu1 %vm2156_vm1, %v2155_v5 }
 0xff1   :  { %2068 = vmatprep.subr.bf16.mxu1 %v2155_v5 }
 0xff3   :  { %2055 = vmatmul.mubr.msk.f32.vlgmr.msra.gmra.mrb[26].mxu1 %vm1502_vm10, %v1393_v6 }
 0xff4   :  { %2070 = vmatprep.mubr.msk.bf16.mxu1 %vm2156_vm1, %v2155_v5  ;;  %vm1801_vm1 = vcmp.lt.s32.totalorder %v1800_v34, 8 }
0x10c2   :  { %v1576_v5 = vpop.f32.mrb[24].mxu1 }
0x10c3   :  { %v2051_v3 = vpop.f32.mrb[25].mxu1 }
0x10c6   :  { %v1652_v4 = vpop.f32.mrb[26].mxu1 }
0x10c7   :  { %v1653_v10 = vadd.f32 %v1652_v4, %v1576_v5  ;;  %v2056_v11 = vpop.f32.mrb[27].mxu1 }
0x10c9   :  { %v1657_v12 = vadd.f32 %v1656_v7, %v1653_v10 }
0x10cb   :  { %v1658_v13 = vsub.f32 0.0, %v1657_v12 }
0x10cd   :  { %v1659_v14 = vmul.f32 1.442695, %v1658_v13 }
0x10cf   :  { %2143 = vpow2.f32 %v1659_v14 }
0x10d9   :  { %v2144_v17 = vpop.eup %2143 }
0x10da   :  { %v1661_v19 = vadd.f32 1.0, %v2144_v17 }
0x10dc   :  { %2145 = vrcp.f32 %v1661_v19 }
0x10e6   :  { %v2146_v23 = vpop.eup %2145 }
0x10e7   :  { %v1667_v24 = vrot.slane %v2146_v23, %v1666_v22 }
0x10e9   :  { %v1668_v25 = vmul.f32 %v1667_v24, %v2404_v55  ;;  %v1669_v26 = vmul.f32 %v1667_v24, %v2407_v58 }
0x10eb   :  { %v1670_v29 = vadd.f32 %v2284_v15, %v1668_v25  ;;  %v1671_v30 = vadd.f32 %v2288_v16, %v1669_v26 }
0x10ed   :  { %2065 = vmatprep.mubr.msk.f32.mxu0 %vm1124_vm4, %v1670_v29 }
0x10ee   :  { %2066 = vmatmul.mubr.msk.f32.vlgmr.msra.gmra.mrb[28].mxu0 %vm1124_vm4, %v1671_v30 }
0x11c1   :  { %v2067_v31 = vpop.f32.mrb[28].mxu0 }
0x11c2   :  { %v1748_v32 = vpop.f32.mrb[29].mxu0 }
0x11c3   :  { %v1757_v33 = vpack.c.bf16 %v2067_v31, %v1748_v32 }
0x11c5   :  { %2069 = vmatpush3.bf16.msra.mxu1 %v1757_v33 }
0x11c8   :  { %2071 = vmatmul.mubr.msk.bf16.vlgmr.msra.gmra.mrb[28].mxu1 %vm60_vm0, %v2276_v9 }
0x129b   :  { %v1792_v55 = vpop.f32.mrb[28].mxu1 }
0x129c   :  { %v2072_v35 = vpop.f32.mrb[29].mxu1  ;;  %v1802_v58 = vsel %vm1801_vm1, %v1792_v55, -1e+30 }
0x129d   :  { %1804 = vmax.xlane.f32.xlu0 %v1802_v58  ;;  %v1795_v15 = vpop.f32.mrb[30].mxu1 }
0x129e   :  { %v2073_v36 = vpop.f32.mrb[31].mxu1  ;;  %v1803_v16 = vsel %vm1801_vm1, %v1795_v15, -1e+30 }
0x129f   :  { %1806 = vmax.xlane.f32.xlu1 %v1803_v16 }
0x132a   :  { %v1805_v37 = vpop.xlane.xlu0 %1804 }
0x132b   :  { %v1808_v38 = vsub.f32 %v1802_v58, %v1805_v37 }
0x132c   :  { %v1807_v39 = vpop.xlane.xlu1 %1806 }
0x132d   :  { %v1810_v40 = vmul.f32 1.442695, %v1808_v38  ;;  %v1809_v41 = vsub.f32 %v1803_v16, %v1807_v39 }
0x132f   :  { %2147 = vpow2.f32 %v1810_v40  ;;  %v1812_v42 = vmul.f32 1.442695, %v1809_v41 }
0x1331   :  { %2149 = vpow2.f32 %v1812_v42 }
0x1339   :  { %v2148_v43 = vpop.eup %2147 }
0x133a   :  { %1814 = vadd.xlane.f32.xlu0 %v2148_v43 }
0x133b   :  { %v2150_v9 = vpop.eup %2149 }
0x133e   :  { %1816 = vadd.xlane.f32.xlu0 %v2150_v9 }
0x13c7   :  { %v1815_v44 = vpop.xlane.xlu0 %1814 }
0x13c8   :  { %2151 = vlog2.f32 %v1815_v44 }
0x13cb   :  { %v1817_v45 = vpop.xlane.xlu0 %1816 }
0x13cc   :  { %2153 = vlog2.f32 %v1817_v45 }
0x13d2   :  { %v2152_v46 = vpop.eup %2151 }
0x13d3   :  { %v1819_v47 = vmul.f32 0.6931472, %v2152_v46 }
0x13d5   :  { %v1822_v48 = vsub.f32 %v1808_v38, %v1819_v47 }
0x13d6   :  { %v2154_v49 = vpop.eup %2153 }
0x13d7   :  { %1824 = vst [vmem:[%s2506_s16] sm:$0xff] %v1822_v48  ;;  %v1821_v18 = vmul.f32 0.6931472, %v2154_v49 }
0x13d9   :  { %v1823_v50 = vsub.f32 %v1809_v41, %v1821_v18 }
0x13db   :  { %1825 = vst [vmem:[%s2506_s16 + $0x8] sm:$0xff] %v1823_v50 }

</bundles_post_ra>
